<compile_context>
chip_gen: v7x
topology: tpu7x:2x2x1
jax: 0.10.0
libtpu: 0.0.40
codegen_flags: <defaults>
</compile_context>

<pallas_src>
import functools

import jax
import jax.numpy as jnp
from jax.experimental import pallas as pl
from jax.experimental.pallas import tpu as pltpu


def _conv_bn_relu_kernel(x_ref, w_ref, b_ref, o_ref, *, n_kh, n_kw, img_w,
                         out_rows, tail_rows, apply_relu, compute_dtype):
    """One group of whole images: implicit im2col + matmul + bias + ReLU.

    x_ref : (rows, C)        flat NHWC rows of the image group (VMEM block)
    w_ref : (KH*KW, C, OCp)  BN-scale-folded weights, OC padded to 128 lanes
    b_ref : (1, OCp)         folded conv-bias + BN bias (f32)
    o_ref : (rows, OCp)      dense (stride-1) correlation at every position
    """
    ocp = o_ref.shape[-1]
    acc = jnp.zeros((out_rows, ocp), jnp.float32)
    # Implicit im2col: the input patch element for flat output position r and
    # filter tap (i, j) is row r + i*W + j of the flat NHWC view, so each tap
    # is just a shifted window of the VMEM block -> KH*KW small MXU matmuls
    # accumulated in f32.  Nothing K-inflated ever touches HBM.
    for i in range(n_kh):
        for j in range(n_kw):
            shift = i * img_w + j
            win = x_ref[pl.ds(shift, out_rows), :].astype(compute_dtype)
            acc = acc + jnp.dot(win, w_ref[i * n_kw + j],
                                preferred_element_type=jnp.float32)
    y = acc + b_ref[...]
    if apply_relu:
        y = jnp.maximum(y, 0.0)
    o_ref[pl.ds(0, out_rows), :] = y.astype(o_ref.dtype)
    if tail_rows:
        # Rows whose window would run past the block (never selected by the
        # wrapper) — write zeros so the whole output block is defined.
        o_ref[pl.ds(out_rows, tail_rows), :] = jnp.zeros(
            (tail_rows, ocp), o_ref.dtype)


def _images_per_step(n, hw, ocp):
    """Pick how many whole images each grid step processes.

    Perf-review targets: >=512 matmul rows per step (amortizes the ~0.35us
    fixed per-step overhead), but keep >=2 grid steps whenever the batch
    allows it so the "parallel" grid axis can shard across both v7x
    TensorCores, and bound the per-step block so the double-buffered
    input/output plus the f32 accumulator stay far below v7x's 64 MiB VMEM.
    """
    max_rows = max(hw, min(4096, (2 * 1024 * 1024) // (ocp * 4)))
    cands = []
    for nb in range(1, n + 1):
        if n % nb:
            continue
        rows = nb * hw
        if nb > 1 and (rows > max_rows or rows % 8):
            continue  # blocked second-minor dims must stay 8-aligned
        cands.append(nb)
    multi = [nb for nb in cands if n // nb >= 2]
    pool = multi if multi else cands
    for nb in pool:              # smallest group hitting the 512-row target
        if nb * hw >= 512:
            return nb
    return pool[-1]              # otherwise: biggest rows we are allowed


def conv2d_bn_relu(
    x,              # [N, C, H, W] float32 (NCHW, matching PyTorch)
    conv_w,         # [OC, C, KH, KW]
    conv_b,         # [OC]
    bn_gamma,       # [OC]
    bn_beta,        # [OC]
    bn_mean,        # [OC] running mean
    bn_var,         # [OC] running var
    *,
    stride=1,
    eps=1e-5,
    act=True,
    compute_dtype=None,   # e.g. jnp.bfloat16 on v6e/v7x; default: x.dtype
):
    """relu(batchnorm(conv2d(x)))  --  padding='valid', BN in inference mode."""
    n, c, h, w = x.shape
    oc, _, kh, kw = conv_w.shape
    oh = (h - kh) // stride + 1
    ow = (w - kw) // stride + 1
    hw = h * w
    ocp = ((oc + 127) // 128) * 128      # lane-dense padded output channels

    # ---- fold conv bias + inference BatchNorm into weights / one bias row ----
    scale = bn_gamma / jnp.sqrt(bn_var + eps)              # [OC]
    bias = (conv_b - bn_mean) * scale + bn_beta            # [OC]
    w_fold = conv_w * scale[:, None, None, None]           # [OC, C, KH, KW]
    w_taps = jnp.transpose(w_fold, (2, 3, 1, 0)).reshape(kh * kw, c, oc)
    w_taps = jnp.pad(w_taps, ((0, 0), (0, 0), (0, ocp - oc)))
    b_row = jnp.pad(bias, (0, ocp - oc)).reshape(1, ocp).astype(jnp.float32)

    if compute_dtype is None:
        compute_dtype = x.dtype
    w_taps = w_taps.astype(compute_dtype)
    # Input is kept in its own dtype; windows are cast to compute_dtype right
    # before the dot so bf16 still gets the fast MXU path while all VMEM loads
    # stay at simple 32-bit sublane offsets.

    # Flat NHWC view (one small layout transpose + a free reshape).  The 9x
    # im2col patch matrix is never materialized in HBM.
    x_flat = jnp.transpose(x, (0, 2, 3, 1)).reshape(n * hw, c)

    nb = _images_per_step(n, hw, ocp)
    rows = nb * hw                              # matmul rows per grid step
    tail = (kh - 1) * w + (kw - 1)              # largest window shift
    out_rows = rows - tail
    grid = (n // nb,)

    kernel = functools.partial(
        _conv_bn_relu_kernel, n_kh=kh, n_kw=kw, img_w=w, out_rows=out_rows,
        tail_rows=tail, apply_relu=act, compute_dtype=compute_dtype)

    out_flat = pl.pallas_call(
        kernel,
        out_shape=jax.ShapeDtypeStruct((n * hw, ocp), x.dtype),
        grid_spec=pltpu.PrefetchScalarGridSpec(
            num_scalar_prefetch=0,
            grid=grid,
            in_specs=[
                pl.BlockSpec((rows, c), lambda i: (i, 0)),
                pl.BlockSpec((kh * kw, c, ocp), lambda i: (0, 0, 0)),
                pl.BlockSpec((1, ocp), lambda i: (0, 0)),
            ],
            out_specs=pl.BlockSpec((rows, ocp), lambda i: (i, 0)),
        ),
        compiler_params=pltpu.CompilerParams(
            dimension_semantics=("parallel",),
            # Explicit scoped-VMEM budget with headroom; blocks are sized so
            # this also fits v7x's 64 MiB physical VMEM comfortably.
            vmem_limit_bytes=48 * 1024 * 1024,
        ),
    )(x_flat, w_taps, b_row)

    # The kernel computed the dense stride-1 correlation at every input
    # position (for stride>1 that's a small s^2 over-compute); pick the
    # strided positions and the real channels, then back to NCHW.
    out = out_flat.reshape(n, h, w, ocp)
    out = out[:, 0:(oh - 1) * stride + 1:stride,
              0:(ow - 1) * stride + 1:stride, :oc]
    # TODO(synk): consumers that accept NHWC can skip this final transpose.
    return jnp.transpose(out, (0, 3, 1, 2))


def _reference(x, conv_w, conv_b, gamma, beta, mean, var, *, stride, eps, act):
    y = jax.lax.conv_general_dilated(
        x, conv_w,
        window_strides=(stride, stride),
        padding="VALID",
        dimension_numbers=("NCHW", "OIHW", "NCHW"),
    )
    y = y + conv_b.reshape(1, -1, 1, 1)
    y = (y - mean.reshape(1, -1, 1, 1)) / jnp.sqrt(var.reshape(1, -1, 1, 1) + eps)
    y = y * gamma.reshape(1, -1, 1, 1) + beta.reshape(1, -1, 1, 1)
    if act:
        y = jnp.maximum(y, 0.0)
    return y


if __name__ == "__main__":
    # Module config: Conv2d(in_channel=4, out_channel=8, kernel=3, stride=1,
    #                       padding='valid', act=True)
    N, C, H, W = 2, 4, 16, 16
    OC, KH, KW, STRIDE = 8, 3, 3, 1

    key = jax.random.PRNGKey(0)
    kx, kw_, kb, kg, kbt, km, kv = jax.random.split(key, 7)

    x = jax.random.normal(kx, (N, C, H, W), dtype=jnp.float32)
    conv_w = 0.1 * jax.random.normal(kw_, (OC, C, KH, KW), dtype=jnp.float32)
    conv_b = 0.1 * jax.random.normal(kb, (OC,), dtype=jnp.float32)
    bn_gamma = 1.0 + 0.1 * jax.random.normal(kg, (OC,), dtype=jnp.float32)
    bn_beta = 0.1 * jax.random.normal(kbt, (OC,), dtype=jnp.float32)
    bn_mean = 0.1 * jax.random.normal(km, (OC,), dtype=jnp.float32)
    bn_var = jnp.abs(1.0 + 0.1 * jax.random.normal(kv, (OC,), dtype=jnp.float32))

    ref = _reference(
        x, conv_w, conv_b, bn_gamma, bn_beta, bn_mean, bn_var,
        stride=STRIDE, eps=1e-5, act=True,
    )

    # Default f32 path.
    out = conv2d_bn_relu(
        x, conv_w, conv_b, bn_gamma, bn_beta, bn_mean, bn_var,
        stride=STRIDE, act=True,
    )
    out = jax.block_until_ready(out)
    assert out.shape == (N, OC, (H - KH) // STRIDE + 1, (W - KW) // STRIDE + 1), out.shape
    assert jnp.allclose(out, ref, atol=1e-4, rtol=1e-4), float(
        jnp.max(jnp.abs(out - ref))
    )

    # bf16 MXU path (the v6e/v7x recommendation): bf16 operands, f32 accumulation.
    out_bf16 = conv2d_bn_relu(
        x, conv_w, conv_b, bn_gamma, bn_beta, bn_mean, bn_var,
        stride=STRIDE, act=True, compute_dtype=jnp.bfloat16,
    )
    out_bf16 = jax.block_until_ready(out_bf16)
    assert jnp.allclose(out_bf16, ref, atol=5e-2, rtol=5e-2), float(
        jnp.max(jnp.abs(out_bf16 - ref))
    )

    print("KERNEL_OK")
</pallas_src>

<mosaic_0001>
module attributes {stable_mosaic.version = 11 : i64} {
  func.func @_conv_bn_relu_kernel(%arg0: i32, %arg1: memref<256x4xf32, #tpu.memory_space<vmem>>, %arg2: memref<9x4x128xf32, #tpu.memory_space<vmem>>, %arg3: memref<1x128xf32, #tpu.memory_space<vmem>>, %arg4: memref<256x128xf32, #tpu.memory_space<vmem>>) attributes {dimension_semantics = [#tpu.dimension_semantics<parallel>], iteration_bounds = array<i64: 2>, scalar_prefetch = 0 : i64, scratch_operands = 0 : i64, tpu.core_type = #tpu.core_type<tc>, window_params = [{transform_indices = @transform_0, window_bounds = array<i64: 256, 4>}, {pipeline_mode = #tpu.pipeline_mode<synchronous>, transform_indices = @transform_1, window_bounds = array<i64: 9, 4, 128>}, {pipeline_mode = #tpu.pipeline_mode<synchronous>, transform_indices = @transform_2, window_bounds = array<i64: 1, 128>}, {transform_indices = @transform_3, window_bounds = array<i64: 256, 128>}]} {
    %cst = arith.constant 0.000000e+00 : f32
    %0 = vector.broadcast %cst : f32 to vector<222x128xf32>
    %c0 = arith.constant 0 : index
    %c0_0 = arith.constant 0 : index
    %1 = vector.load %arg1[%c0, %c0_0] : memref<256x4xf32, #tpu.memory_space<vmem>>, vector<222x4xf32>
    %c0_1 = arith.constant 0 : index
    %c0_2 = arith.constant 0 : index
    %c0_3 = arith.constant 0 : index
    %2 = vector.load %arg2[%c0_1, %c0_2, %c0_3] : memref<9x4x128xf32, #tpu.memory_space<vmem>>, vector<1x4x128xf32>
    %3 = vector.shape_cast %2 : vector<1x4x128xf32> to vector<4x128xf32>
    %cst_4 = arith.constant dense<0.000000e+00> : vector<222x128xf32>
    %4 = tpu.matmul %1, %3, %cst_4 {dimension_numbers = #tpu.dot_dimension_numbers<[1], [0], [0], [1], [0, 0, 1, 1], [], []>} : vector<222x4xf32>, vector<4x128xf32>, vector<222x128xf32> -> vector<222x128xf32>
    %5 = arith.addf %0, %4 : vector<222x128xf32>
    %c1 = arith.constant 1 : index
    %c0_5 = arith.constant 0 : index
    %6 = vector.load %arg1[%c1, %c0_5] : memref<256x4xf32, #tpu.memory_space<vmem>>, vector<222x4xf32>
    %c1_6 = arith.constant 1 : index
    %c0_7 = arith.constant 0 : index
    %c0_8 = arith.constant 0 : index
    %7 = vector.load %arg2[%c1_6, %c0_7, %c0_8] : memref<9x4x128xf32, #tpu.memory_space<vmem>>, vector<1x4x128xf32>
    %8 = vector.shape_cast %7 : vector<1x4x128xf32> to vector<4x128xf32>
    %cst_9 = arith.constant dense<0.000000e+00> : vector<222x128xf32>
    %9 = tpu.matmul %6, %8, %cst_9 {dimension_numbers = #tpu.dot_dimension_numbers<[1], [0], [0], [1], [0, 0, 1, 1], [], []>} : vector<222x4xf32>, vector<4x128xf32>, vector<222x128xf32> -> vector<222x128xf32>
    %10 = arith.addf %5, %9 : vector<222x128xf32>
    %c2 = arith.constant 2 : index
    %c0_10 = arith.constant 0 : index
    %11 = vector.load %arg1[%c2, %c0_10] : memref<256x4xf32, #tpu.memory_space<vmem>>, vector<222x4xf32>
    %c2_11 = arith.constant 2 : index
    %c0_12 = arith.constant 0 : index
    %c0_13 = arith.constant 0 : index
    %12 = vector.load %arg2[%c2_11, %c0_12, %c0_13] : memref<9x4x128xf32, #tpu.memory_space<vmem>>, vector<1x4x128xf32>
    %13 = vector.shape_cast %12 : vector<1x4x128xf32> to vector<4x128xf32>
    %cst_14 = arith.constant dense<0.000000e+00> : vector<222x128xf32>
    %14 = tpu.matmul %11, %13, %cst_14 {dimension_numbers = #tpu.dot_dimension_numbers<[1], [0], [0], [1], [0, 0, 1, 1], [], []>} : vector<222x4xf32>, vector<4x128xf32>, vector<222x128xf32> -> vector<222x128xf32>
    %15 = arith.addf %10, %14 : vector<222x128xf32>
    %c16 = arith.constant 16 : index
    %c0_15 = arith.constant 0 : index
    %16 = vector.load %arg1[%c16, %c0_15] : memref<256x4xf32, #tpu.memory_space<vmem>>, vector<222x4xf32>
    %c3 = arith.constant 3 : index
    %c0_16 = arith.constant 0 : index
    %c0_17 = arith.constant 0 : index
    %17 = vector.load %arg2[%c3, %c0_16, %c0_17] : memref<9x4x128xf32, #tpu.memory_space<vmem>>, vector<1x4x128xf32>
    %18 = vector.shape_cast %17 : vector<1x4x128xf32> to vector<4x128xf32>
    %cst_18 = arith.constant dense<0.000000e+00> : vector<222x128xf32>
    %19 = tpu.matmul %16, %18, %cst_18 {dimension_numbers = #tpu.dot_dimension_numbers<[1], [0], [0], [1], [0, 0, 1, 1], [], []>} : vector<222x4xf32>, vector<4x128xf32>, vector<222x128xf32> -> vector<222x128xf32>
    %20 = arith.addf %15, %19 : vector<222x128xf32>
    %c17 = arith.constant 17 : index
    %c0_19 = arith.constant 0 : index
    %21 = vector.load %arg1[%c17, %c0_19] : memref<256x4xf32, #tpu.memory_space<vmem>>, vector<222x4xf32>
    %c4 = arith.constant 4 : index
    %c0_20 = arith.constant 0 : index
    %c0_21 = arith.constant 0 : index
    %22 = vector.load %arg2[%c4, %c0_20, %c0_21] : memref<9x4x128xf32, #tpu.memory_space<vmem>>, vector<1x4x128xf32>
    %23 = vector.shape_cast %22 : vector<1x4x128xf32> to vector<4x128xf32>
    %cst_22 = arith.constant dense<0.000000e+00> : vector<222x128xf32>
    %24 = tpu.matmul %21, %23, %cst_22 {dimension_numbers = #tpu.dot_dimension_numbers<[1], [0], [0], [1], [0, 0, 1, 1], [], []>} : vector<222x4xf32>, vector<4x128xf32>, vector<222x128xf32> -> vector<222x128xf32>
    %25 = arith.addf %20, %24 : vector<222x128xf32>
    %c18 = arith.constant 18 : index
    %c0_23 = arith.constant 0 : index
    %26 = vector.load %arg1[%c18, %c0_23] : memref<256x4xf32, #tpu.memory_space<vmem>>, vector<222x4xf32>
    %c5 = arith.constant 5 : index
    %c0_24 = arith.constant 0 : index
    %c0_25 = arith.constant 0 : index
    %27 = vector.load %arg2[%c5, %c0_24, %c0_25] : memref<9x4x128xf32, #tpu.memory_space<vmem>>, vector<1x4x128xf32>
    %28 = vector.shape_cast %27 : vector<1x4x128xf32> to vector<4x128xf32>
    %cst_26 = arith.constant dense<0.000000e+00> : vector<222x128xf32>
    %29 = tpu.matmul %26, %28, %cst_26 {dimension_numbers = #tpu.dot_dimension_numbers<[1], [0], [0], [1], [0, 0, 1, 1], [], []>} : vector<222x4xf32>, vector<4x128xf32>, vector<222x128xf32> -> vector<222x128xf32>
    %30 = arith.addf %25, %29 : vector<222x128xf32>
    %c32 = arith.constant 32 : index
    %c0_27 = arith.constant 0 : index
    %31 = vector.load %arg1[%c32, %c0_27] : memref<256x4xf32, #tpu.memory_space<vmem>>, vector<222x4xf32>
    %c6 = arith.constant 6 : index
    %c0_28 = arith.constant 0 : index
    %c0_29 = arith.constant 0 : index
    %32 = vector.load %arg2[%c6, %c0_28, %c0_29] : memref<9x4x128xf32, #tpu.memory_space<vmem>>, vector<1x4x128xf32>
    %33 = vector.shape_cast %32 : vector<1x4x128xf32> to vector<4x128xf32>
    %cst_30 = arith.constant dense<0.000000e+00> : vector<222x128xf32>
    %34 = tpu.matmul %31, %33, %cst_30 {dimension_numbers = #tpu.dot_dimension_numbers<[1], [0], [0], [1], [0, 0, 1, 1], [], []>} : vector<222x4xf32>, vector<4x128xf32>, vector<222x128xf32> -> vector<222x128xf32>
    %35 = arith.addf %30, %34 : vector<222x128xf32>
    %c33 = arith.constant 33 : index
    %c0_31 = arith.constant 0 : index
    %36 = vector.load %arg1[%c33, %c0_31] : memref<256x4xf32, #tpu.memory_space<vmem>>, vector<222x4xf32>
    %c7 = arith.constant 7 : index
    %c0_32 = arith.constant 0 : index
    %c0_33 = arith.constant 0 : index
    %37 = vector.load %arg2[%c7, %c0_32, %c0_33] : memref<9x4x128xf32, #tpu.memory_space<vmem>>, vector<1x4x128xf32>
    %38 = vector.shape_cast %37 : vector<1x4x128xf32> to vector<4x128xf32>
    %cst_34 = arith.constant dense<0.000000e+00> : vector<222x128xf32>
    %39 = tpu.matmul %36, %38, %cst_34 {dimension_numbers = #tpu.dot_dimension_numbers<[1], [0], [0], [1], [0, 0, 1, 1], [], []>} : vector<222x4xf32>, vector<4x128xf32>, vector<222x128xf32> -> vector<222x128xf32>
    %40 = arith.addf %35, %39 : vector<222x128xf32>
    %c34 = arith.constant 34 : index
    %c0_35 = arith.constant 0 : index
    %41 = vector.load %arg1[%c34, %c0_35] : memref<256x4xf32, #tpu.memory_space<vmem>>, vector<222x4xf32>
    %c8 = arith.constant 8 : index
    %c0_36 = arith.constant 0 : index
    %c0_37 = arith.constant 0 : index
    %42 = vector.load %arg2[%c8, %c0_36, %c0_37] : memref<9x4x128xf32, #tpu.memory_space<vmem>>, vector<1x4x128xf32>
    %43 = vector.shape_cast %42 : vector<1x4x128xf32> to vector<4x128xf32>
    %cst_38 = arith.constant dense<0.000000e+00> : vector<222x128xf32>
    %44 = tpu.matmul %41, %43, %cst_38 {dimension_numbers = #tpu.dot_dimension_numbers<[1], [0], [0], [1], [0, 0, 1, 1], [], []>} : vector<222x4xf32>, vector<4x128xf32>, vector<222x128xf32> -> vector<222x128xf32>
    %45 = arith.addf %40, %44 : vector<222x128xf32>
    %c0_39 = arith.constant 0 : index
    %c0_40 = arith.constant 0 : index
    %46 = vector.load %arg3[%c0_39, %c0_40] : memref<1x128xf32, #tpu.memory_space<vmem>>, vector<1x128xf32>
    %47 = vector.broadcast %46 : vector<1x128xf32> to vector<222x128xf32>
    %48 = arith.addf %45, %47 : vector<222x128xf32>
    %cst_41 = arith.constant 0.000000e+00 : f32
    %49 = vector.broadcast %cst_41 : f32 to vector<222x128xf32>
    %50 = arith.maximumf %48, %49 : vector<222x128xf32>
    %c0_42 = arith.constant 0 : index
    %c0_43 = arith.constant 0 : index
    %51 = vector.load %arg4[%c0_42, %c0_43] : memref<256x128xf32, #tpu.memory_space<vmem>>, vector<222x128xf32>
    tpu.vector_store %arg4[%c0_42, %c0_43], %50 {strides = array<i32>} : memref<256x128xf32, #tpu.memory_space<vmem>>, vector<222x128xf32>,
    %cst_44 = arith.constant 0.000000e+00 : f32
    %52 = vector.broadcast %cst_44 : f32 to vector<34x128xf32>
    %c222 = arith.constant 222 : index
    %c0_45 = arith.constant 0 : index
    %53 = vector.load %arg4[%c222, %c0_45] : memref<256x128xf32, #tpu.memory_space<vmem>>, vector<34x128xf32>
    tpu.vector_store %arg4[%c222, %c0_45], %52 {strides = array<i32>} : memref<256x128xf32, #tpu.memory_space<vmem>>, vector<34x128xf32>,
    return
  }
  func.func @transform_0(%arg0: i32) -> (i32, i32) {
    %c0_i32 = arith.constant 0 : i32
    %c0_i32_0 = arith.constant 0 : i32
    return %arg0, %c0_i32 : i32, i32
  }
  func.func @transform_1(%arg0: i32) -> (i32, i32, i32) {
    %c0_i32 = arith.constant 0 : i32
    %c0_i32_0 = arith.constant 0 : i32
    %c0_i32_1 = arith.constant 0 : i32
    %c0_i32_2 = arith.constant 0 : i32
    return %c0_i32, %c0_i32_0, %c0_i32_1 : i32, i32, i32
  }
  func.func @transform_2(%arg0: i32) -> (i32, i32) {
    %c0_i32 = arith.constant 0 : i32
    %c0_i32_0 = arith.constant 0 : i32
    %c0_i32_1 = arith.constant 0 : i32
    return %c0_i32, %c0_i32_0 : i32, i32
  }
  func.func @transform_3(%arg0: i32) -> (i32, i32) {
    %c0_i32 = arith.constant 0 : i32
    %c0_i32_0 = arith.constant 0 : i32
    return %arg0, %c0_i32 : i32, i32
  }
}

</mosaic_0001>

<bundles_post_ra>
// kernel: tpu_custom_call.1
= control target key start
LH: loop header
LB: loop body
LE: loop exit
PB: predicated region body
PF: predicated region fallthrough
CT: control target
= control target key end

     0   :  { %8 = vsyncpa [#allocation3], 0  ;;  %s5723_s0 = inlined_call_operand.vmem [shape: f32[512,4], index: 0, kind: input, shape index: {}]   ;;  %s5724_s1 = inlined_call_operand.vmem [shape: f32[9,4,128], index: 1, kind: input, shape index: {}]   ;;  %s5725_s2 = inlined_call_operand.vmem [shape: f32[1,128], index: 2, kind: input, shape index: {}]   ;;  %s5726_s3 = inlined_call_operand.hbm [shape: f32[512,128], index: 3, kind: output, shape index: {}]  }
   0x1   :  { %10 = vsyncpa [#allocation3 + $0x1], 0  ;;  %s4735_s12 = smov 0   ;;  %s4737_s13 = smov 0  }
   0x2   :  { %s4739_s14 = smov 0   ;;  %s4741_s15 = smov 0  }
   0x3 LB: > { %s4756_s16 = sadd.s32 4294967295, %s4709_s15   ;;  %s3439_s17 = sadd.s32 4294967294, %s4709_s15   ;;  %s4709_s15 = sphi %s4741_s15, %s5789_s15   ;;  %s4705_s14 = sphi %s4739_s14, %s5788_s14   ;;  %s4701_s13 = sphi %s4737_s13, %s5787_s13   ;;  %s4697_s12 = sphi %s4735_s12, %s5786_s12  }
   0x4   : > { %s4760_s18 = sadd.s32 1, %s4709_s15   ;;  %s91_s19 = sadd.s32 1, %s4705_s14 }
   0x5   : > { %s88_s20 = ssub.s32 %s4709_s15, %s4760_s18  ;;  %p101_p0 = scmp.ne.s32.totalorder %s4705_s14, %s4701_s13 }
   0x6   : > { %p89_p1 = scmp.eq.s32.totalorder %s88_s20, 0  ;;  %p102_p2 = scmp.eq.s32.totalorder %s4756_s16, 1 }
   0x7   : > { %p107_p3 = scmp.ne.s32.totalorder %s4701_s13, %s4697_s12  ;;  %p108_p4 = scmp.eq.s32.totalorder %s3439_s17, 1 }
   0x8   : > { %s4771_s21 = scalar_select %p89_p1, %s4705_s14, %s91_s19  }
   0x9   : > { %p4773_p5 = por %p102_p2, %p101_p0  ;;  %p4777_p6 = por %p108_p4, %p107_p3 }
   0xa   : > { %p3442_p7 = scmp.ge.s32.totalorder %s4709_s15, 1  ;;  %p141_p8 = scmp.lt.s32.totalorder %s4709_s15, 3 }
   0xc   : > { %p142_p9 = pnand %p3442_p7, %p141_p8 }
   0xe   : > { %145 = sbr.rel (%p142_p9) target bundleno = 511 (0x1ff), region = 32 }
  0x15   : > { %v3446_v0 = vld [vmem:[%s5724_s1 + $0x4] sm:$0xf]  ;;  %vm316_vm0 = vcmask 1043456   ;;  %v4789_v1 = vld [vmem:[%s5724_s1 + $0x10] sm:$0xf]  ;;  %s3444_s28 = sshll.u32 %s4756_s16, 5 }
  0x16   : > { %3983 = vmatprep.subr.msk.mxu1 %vm316_vm0, %v3446_v0  ;;  %4159 = vmatprep.subr.msk.mxu0 %vm316_vm0, %v4789_v1  ;;  %p166_p10 = scmp.lt.s32.totalorder %s3444_s28, 63  ;;  %v200_v2 = vld [vmem:[%s5724_s1] sm:$0xf]  ;;  %v3595_v3 = vld [vmem:[%s5724_s1 + $0x14] sm:$0xf]  ;;  %vm231_vm1 = vcmask 31744  }
  0x17   : > { %3984 = vmatpush3.msk.msra.mxu1 %vm316_vm0, %v3446_v0  ;;  %4160 = vmatpush3.msk.msra.mxu0 %vm316_vm0, %v4789_v1  ;;  %v3625_v9 = vld [vmem:[%s5724_s1 + $0x18] sm:$0xf]  ;;  %v4828_v10 = vld [vmem:[%s5724_s1 + $0x8] sm:$0xf]  ;;  %v4933_v26 = vld [vmem:[%s5724_s1 + $0x1c] sm:$0xf] }
  0x18   : > { %s5791_s28 = smov (!%p166_p10, %s3444_s28), 63  ;;  %4027 = vmatprep.subr.msk.mxu1 %vm316_vm0, %v200_v2  ;;  %4203 = vmatprep.subr.msk.mxu0 %vm316_vm0, %v3595_v3  ;;  %v5073_v55 = vld [vmem:[%s5724_s1 + $0xc] sm:$0xf]  ;;  %s162_s29 = sand.u32 1, %s4701_s13  }
  0x19   : > { %s3445_s6 = sshll.u32 %s5791_s28, 3  ;;  %s3443_s30 = sshll.u32 %s162_s29, 8 }
  0x1a   : > { %s4809_s9 = scalar_lea.vmem %s5723_s0, %s3445_s6  ;;  %s5600_s4 = scalar_lea.vmem [#allocation2], %s3443_s30 }
  0x1b   : > { %v201_v4 = vld [vmem:[%s4809_s9 + $0x1] sm:$0xff]  ;;  %v1517_v5 = vld [vmem:[%s4809_s9 + $0x11] sm:$0xff]  ;;  %v202_v6 = vld [vmem:[%s4809_s9 + $0x9] sm:$0xff]  ;;  %s3721_s7 = sshll.u32 %s4756_s16, 12  ;;  %s3377_s8 = sshll.u32 %s5600_s4, 4  ;;  %s5676_s8 = int_to_ptr.vmem [resolvable:$true] %s3377_s8 }
  0x1c   : > { %3985 = vmatprep.mubr.msk.f32.mxu1 %vm231_vm1, %v201_v4  ;;  %4161 = vmatprep.mubr.msk.f32.mxu0 %vm231_vm1, %v1517_v5  ;;  %v1518_v7 = vld [vmem:[%s4809_s9 + $0x19] sm:$0xff]  ;;  %v4818_v8 = vld [vmem:[%s4809_s9 + $0x21] sm:$0xff]  ;;  %v4833_v11 = vld [vmem:[%s4809_s9 + $0x29] sm:$0xff]  ;;  %s5674_s11 = scalar_lea.hbm %s5726_s3, %s3721_s7  ;;  %s5682_s16 = scalar_lea.sflag [#allocation3], %s162_s29 }
  0x1d   : > { %3986 = vmatmul.mubr.msk.f32.vlgmr.msra.gmra.mrb[0].mxu1 %vm231_vm1, %v202_v6  ;;  %4162 = vmatmul.mubr.msk.f32.vlgmr.msra.gmra.mrb[0].mxu0 %vm231_vm1, %v1518_v7  ;;  %v4839_v12 = vld [vmem:[%s4809_s9 + $0x31] sm:$0xff]  ;;  %v4852_v13 = vld [vmem:[%s4809_s9 + $0x39] sm:$0xff]  ;;  %v4855_v14 = vld [vmem:[%s4809_s9 + $0x41] sm:$0xff]  ;;  %s4647_s17 = scalar_lea.vmem %s5676_s8, 4096  ;;  %s4712_s19 = smov [#allocation2]  }
  0x1e   : > { %4028 = vmatpush3.msk.msra.mxu1 %vm316_vm0, %v200_v2  ;;  %4204 = vmatpush3.msk.msra.mxu0 %vm316_vm0, %v3595_v3  ;;  %v4866_v15 = vld [vmem:[%s4809_s9 + $0x49] sm:$0xff]  ;;  %v4869_v16 = vld [vmem:[%s4809_s9 + $0x51] sm:$0xff]  ;;  %v4880_v17 = vld [vmem:[%s4809_s9 + $0x59] sm:$0xff]  ;;  %p4648_p11 = scmp.ne.s32.totalorder %s5676_s8, %s4647_s17  ;;  %s4651_s20 = sshll.u32 %s4712_s19, 4  ;;  %s4652_s20 = int_to_ptr.vmem [resolvable:$false] %s4651_s20 }
  0x1f   : > { %3988 = vmatprep.mubr.msk.f32.mxu1 %vm231_vm1, %v1517_v5  ;;  %4164 = vmatprep.mubr.msk.f32.mxu0 %vm231_vm1, %v4818_v8  ;;  %v4883_v18 = vld [vmem:[%s4809_s9 + $0x61] sm:$0xff]  ;;  %v4894_v19 = vld [vmem:[%s4809_s9 + $0x69] sm:$0xff]  ;;  %v4897_v20 = vld [vmem:[%s4809_s9 + $0x71] sm:$0xff]  ;;  %s4653_s24 = scalar_lea.vmem %s4652_s20, 8192  ;;  %p4654_p0 = scmp.lt.s32.totalorder %s5676_s8, %s4652_s20 }
  0x20   : > { %4247 = vmatprep.subr.msk.mxu0 %vm316_vm0, %v3625_v9  ;;  %4071 = vmatprep.subr.msk.mxu1 %vm316_vm0, %v4828_v10  ;;  %v4908_v21 = vld [vmem:[%s4809_s9 + $0x79] sm:$0xff]  ;;  %v4925_v24 = vld [vmem:[%s4809_s9 + $0x81] sm:$0xff]  ;;  %v4943_v27 = vld [vmem:[%s4809_s9 + $0x89] sm:$0xff]  ;;  %p4649_p12 = pnand %p4648_p11, %p4773_p5  ;;  %p4655_p1 = scmp.lt.s32.totalorder %s4653_s24, %s4647_s17 }
  0x21   : > { %3989 = vmatmul.mubr.msk.f32.gmra.mrb[2].mxu1 %vm231_vm1, %v1518_v7  ;;  %4165 = vmatmul.mubr.msk.f32.gmra.mrb[2].mxu0 %vm231_vm1, %v4833_v11  ;;  %v4911_v22 = vld [vmem:[%s4809_s9 + $0x12] sm:$0xff]  ;;  %v4922_v23 = vld [vmem:[%s4809_s9 + $0x1a] sm:$0xff]  ;;  %v4928_v25 = vld [vmem:[%s4809_s9 + $0x22] sm:$0xff] }
  0x22   : > { %3991 = vmatprep.mubr.msk.f32.mxu1 %vm231_vm1, %v4818_v8  ;;  %4167 = vmatprep.mubr.msk.f32.mxu0 %vm231_vm1, %v4839_v12  ;;  %v4946_v28 = vld [vmem:[%s4809_s9 + $0x2a] sm:$0xff]  ;;  %v4954_v30 = vld [vmem:[%s4809_s9 + $0x32] sm:$0xff]  ;;  %v4970_v32 = vld [vmem:[%s4809_s9 + $0x3a] sm:$0xff]  ;;  %p4650_p13 = pneg %p4649_p12  ;;  %p4656_p2 = por %p4655_p1, %p4654_p0 }
  0x23   : > { %v4951_v29 = vld [vmem:[%s4809_s9 + $0x91] sm:$0xff]  ;;  %v4967_v31 = vld [vmem:[%s4809_s9 + $0x99] sm:$0xff]  ;;  %v4973_v33 = vld [vmem:[%s4809_s9 + $0xa1] sm:$0xff] }
  0x24   : > { %v4976_v34 = vld [vmem:[%s4809_s9 + $0x42] sm:$0xff]  ;;  %v4990_v36 = vld [vmem:[%s4809_s9 + $0x4a] sm:$0xff]  ;;  %v4996_v38 = vld [vmem:[%s4809_s9 + $0x52] sm:$0xff]  ;;  %p4657_p3 = pnand %p4656_p2, %p4650_p13 }
  0x25   : > { %3992 = vmatmul.mubr.msk.f32.gmra.mrb[4].mxu1 %vm231_vm1, %v4833_v11  ;;  %4168 = vmatmul.mubr.msk.f32.gmra.mrb[4].mxu0 %vm231_vm1, %v4852_v13  ;;  %v4987_v35 = vld [vmem:[%s4809_s9 + $0xa9] sm:$0xff]  ;;  %v4993_v37 = vld [vmem:[%s4809_s9 + $0xb1] sm:$0xff]  ;;  %v5007_v39 = vld [vmem:[%s4809_s9 + $0xb9] sm:$0xff] }
  0x26   : > { %3994 = vmatprep.mubr.msk.f32.mxu1 %vm231_vm1, %v4839_v12  ;;  %4170 = vmatprep.mubr.msk.f32.mxu0 %vm231_vm1, %v4855_v14  ;;  %5752 = vst [vmem:[#allocation5_spill] sm:$0xff] %v4987_v35  ;;  %5753 = vst [vmem:[#allocation6_spill] sm:$0xff] %v4993_v37  ;;  %v5010_v40 = vld [vmem:[%s4809_s9 + $0x5a] sm:$0xff]  ;;  %v5016_v42 = vld [vmem:[%s4809_s9 + $0x62] sm:$0xff] }
  0x27   : > { %5754 = vst [vmem:[#allocation7_spill] sm:$0xff] %v5007_v39  ;;  %v5013_v41 = vld [vmem:[%s4809_s9 + $0xc1] sm:$0xff]  ;;  %v5027_v43 = vld [vmem:[%s4809_s9 + $0xc9] sm:$0xff]  ;;  %v5033_v45 = vld [vmem:[%s4809_s9 + $0xd1] sm:$0xff] }
  0x28   : > { %5755 = vst [vmem:[#allocation8_spill] sm:$0xff] %v5013_v41  ;;  %5756 = vst [vmem:[#allocation9_spill] sm:$0xff] %v5027_v43  ;;  %v5030_v44 = vld [vmem:[%s4809_s9 + $0x6a] sm:$0xff]  ;;  %v5036_v46 = vld [vmem:[%s4809_s9 + $0x72] sm:$0xff] }
  0x29   : > { %3995 = vmatmul.mubr.msk.f32.gmra.mrb[6].mxu1 %vm231_vm1, %v4852_v13  ;;  %4171 = vmatmul.mubr.msk.f32.gmra.mrb[6].mxu0 %vm231_vm1, %v4866_v15  ;;  %5757 = vst [vmem:[#allocation10_spill] sm:$0xff] %v5033_v45  ;;  %v228_v47 = vld [vmem:[%s4809_s9 + $0xd9] sm:$0x3f]  ;;  %v172_v49 = vld [vmem:[%s4809_s9] sm:$0xff]  ;;  %v173_v51 = vld [vmem:[%s4809_s9 + $0x8] sm:$0xff] }
  0x2a   : > { %3997 = vmatprep.mubr.msk.f32.mxu1 %vm231_vm1, %v4855_v14  ;;  %4173 = vmatprep.mubr.msk.f32.mxu0 %vm231_vm1, %v4869_v16  ;;  %v5048_v48 = vld [vmem:[%s4809_s9 + $0x7a] sm:$0xff]  ;;  %v5052_v50 = vld [vmem:[%s4809_s9 + $0x82] sm:$0xff]  ;;  %v5062_v52 = vld [vmem:[%s4809_s9 + $0x8a] sm:$0xff] }
  0x2b   : > { %v5065_v53 = vld [vmem:[%s4809_s9 + $0x10] sm:$0xff]  ;;  %v5083_v56 = vld [vmem:[%s4809_s9 + $0x18] sm:$0xff]  ;;  %v5091_v58 = vld [vmem:[%s4809_s9 + $0x20] sm:$0xff] }
  0x2c   : > { %v5068_v54 = vld [vmem:[%s4809_s9 + $0x92] sm:$0xff]  ;;  %v5086_v57 = vld [vmem:[%s4809_s9 + $0x9a] sm:$0xff]  ;;  %v5094_v59 = vld [vmem:[%s4809_s9 + $0xa2] sm:$0xff] }
  0x2d   : > { %3998 = vmatmul.mubr.msk.f32.gmra.mrb[8].mxu1 %vm231_vm1, %v4866_v15  ;;  %4174 = vmatmul.mubr.msk.f32.gmra.mrb[8].mxu0 %vm231_vm1, %v4880_v17  ;;  %v5107_v60 = vld [vmem:[%s4809_s9 + $0x28] sm:$0xff]  ;;  %v5113_v62 = vld [vmem:[%s4809_s9 + $0x30] sm:$0xff]  ;;  %v5127_v0 = vld [vmem:[%s4809_s9 + $0x38] sm:$0xff] }
  0x2e   : > { %4000 = vmatprep.mubr.msk.f32.mxu1 %vm231_vm1, %v4869_v16  ;;  %4176 = vmatprep.mubr.msk.f32.mxu0 %vm231_vm1, %v4883_v18  ;;  %v5110_v61 = vld [vmem:[%s4809_s9 + $0xaa] sm:$0xff]  ;;  %5758 = vst [vmem:[#allocation11_spill] sm:$0xff] %v5113_v62  ;;  %v5116_v63 = vld [vmem:[%s4809_s9 + $0xb2] sm:$0xff]  ;;  %5759 = vst [vmem:[#allocation12_spill] sm:$0xff] %v5127_v0 }
  0x2f   : > { %v5130_v2 = vld [vmem:[%s4809_s9 + $0xba] sm:$0xff]  ;;  %v5136_v4 = vld [vmem:[%s4809_s9 + $0xc2] sm:$0xff]  ;;  %v5150_v6 = vld [vmem:[%s4809_s9 + $0xca] sm:$0xff] }
  0x30   : > { %v5133_v3 = vld [vmem:[%s4809_s9 + $0x40] sm:$0xff]  ;;  %v5147_v5 = vld [vmem:[%s4809_s9 + $0x48] sm:$0xff]  ;;  %v5153_v7 = vld [vmem:[%s4809_s9 + $0x50] sm:$0xff] }
  0x31   : > { %4001 = vmatmul.mubr.msk.f32.gmra.mrb[10].mxu1 %vm231_vm1, %v4880_v17  ;;  %4177 = vmatmul.mubr.msk.f32.gmra.mrb[10].mxu0 %vm231_vm1, %v4894_v19  ;;  %5760 = vst [vmem:[#allocation13_spill] sm:$0xff] %v5133_v3  ;;  %5761 = vst [vmem:[#allocation14_spill] sm:$0xff] %v5147_v5 }
  0x32   : > { %4003 = vmatprep.mubr.msk.f32.mxu1 %vm231_vm1, %v4883_v18  ;;  %4179 = vmatprep.mubr.msk.f32.mxu0 %vm231_vm1, %v4897_v20  ;;  %5762 = vst [vmem:[#allocation15_spill] sm:$0xff] %v5153_v7 }
  0x35   : > { %4004 = vmatmul.mubr.msk.f32.gmra.mrb[12].mxu1 %vm231_vm1, %v4894_v19  ;;  %4180 = vmatmul.mubr.msk.f32.gmra.mrb[12].mxu0 %vm231_vm1, %v4908_v21 }
  0x36   : > { %4006 = vmatprep.mubr.msk.f32.mxu1 %vm231_vm1, %v4897_v20  ;;  %4205 = vmatprep.mubr.msk.f32.mxu0 %vm231_vm1, %v4911_v22 }
  0x39   : > { %4007 = vmatmul.mubr.msk.f32.gmra.mrb[14].mxu1 %vm231_vm1, %v4908_v21  ;;  %4206 = vmatmul.mubr.msk.f32.vlgmr.msra.gmra.mrb[0].mxu0 %vm231_vm1, %v4922_v23 }
  0x3a   : > { %4248 = vmatpush3.msk.msra.mxu0 %vm316_vm0, %v3625_v9  ;;  %4009 = vmatprep.mubr.msk.f32.mxu1 %vm231_vm1, %v4925_v24  ;;  %v5156_v9 = vld [vmem:[%s4809_s9 + $0xd2] sm:$0xff] }
  0x3b   : > { %4208 = vmatprep.mubr.msk.f32.mxu0 %vm231_vm1, %v4928_v25  ;;  %4291 = vmatprep.subr.msk.mxu0 %vm316_vm0, %v4933_v26 }
  0x3d   : > { %4010 = vmatmul.mubr.msk.f32.gmra.mrb[16].mxu1 %vm231_vm1, %v4943_v27  ;;  %4209 = vmatmul.mubr.msk.f32.gmra.mrb[2].mxu0 %vm231_vm1, %v4946_v28 }
  0x3e   : > { %4012 = vmatprep.mubr.msk.f32.mxu1 %vm231_vm1, %v4951_v29  ;;  %4211 = vmatprep.mubr.msk.f32.mxu0 %vm231_vm1, %v4954_v30 }
  0x41   : > { %4013 = vmatmul.mubr.msk.f32.gmra.mrb[18].mxu1 %vm231_vm1, %v4967_v31  ;;  %4212 = vmatmul.mubr.msk.f32.gmra.mrb[4].mxu0 %vm231_vm1, %v4970_v32 }
  0x42   : > { %4015 = vmatprep.mubr.msk.f32.mxu1 %vm231_vm1, %v4973_v33  ;;  %4214 = vmatprep.mubr.msk.f32.mxu0 %vm231_vm1, %v4976_v34 }
  0x45   : > { %4016 = vmatmul.mubr.msk.f32.gmra.mrb[20].mxu1 %vm231_vm1, %v4987_v35  ;;  %4215 = vmatmul.mubr.msk.f32.gmra.mrb[6].mxu0 %vm231_vm1, %v4990_v36  ;;  %v817_v35 = vld [vmem:[%s4809_s9 + $0x2] sm:$0xff] }
  0x46   : > { %4018 = vmatprep.mubr.msk.f32.mxu1 %vm231_vm1, %v4993_v37  ;;  %4217 = vmatprep.mubr.msk.f32.mxu0 %vm231_vm1, %v4996_v38  ;;  %v5225_v37 = vld [vmem:[%s4809_s9 + $0x90] sm:$0xff] }
  0x49   : > { %4019 = vmatmul.mubr.msk.f32.gmra.mrb[22].mxu1 %vm231_vm1, %v5007_v39  ;;  %4218 = vmatmul.mubr.msk.f32.gmra.mrb[8].mxu0 %vm231_vm1, %v5010_v40  ;;  %v5209_v39 = vld [vmem:[%s5724_s1 + $0x20] sm:$0xf] }
  0x4a   : > { %4021 = vmatprep.mubr.msk.f32.mxu1 %vm231_vm1, %v5013_v41  ;;  %4220 = vmatprep.mubr.msk.f32.mxu0 %vm231_vm1, %v5016_v42  ;;  %v5191_v41 = vld [vmem:[%s4809_s9 + $0x70] sm:$0xff] }
  0x4b   : > { %5768 = vst [vmem:[#allocation21_spill] sm:$0xff] %v5191_v41 }
  0x4d   : > { %4022 = vmatmul.mubr.msk.f32.gmra.mrb[24].mxu1 %vm231_vm1, %v5027_v43  ;;  %4221 = vmatmul.mubr.msk.f32.gmra.mrb[10].mxu0 %vm231_vm1, %v5030_v44  ;;  %v1894_v43 = vld [vmem:[%s4809_s9 + $0xea] sm:$0x3f] }
  0x4e   : > { %4024 = vmatprep.mubr.msk.f32.mxu1 %vm231_vm1, %v5033_v45  ;;  %4223 = vmatprep.mubr.msk.f32.mxu0 %vm231_vm1, %v5036_v46  ;;  %v5187_v45 = vld [vmem:[%s4809_s9 + $0x68] sm:$0xff] }
  0x4f   : > { %5767 = vst [vmem:[#allocation20_spill] sm:$0xff] %v5187_v45 }
  0x51   : > { %4025 = vmatmul.mubr.msk.f32.gmra.mrb[26].mxu1 %vm231_vm1, %v228_v47  ;;  %4224 = vmatmul.mubr.msk.f32.gmra.mrb[12].mxu0 %vm231_vm1, %v5048_v48  ;;  %v5170_v47 = vld [vmem:[%s4809_s9 + $0xda] sm:$0xff] }
  0x52   : > { %4029 = vmatprep.mubr.msk.f32.mxu1 %vm231_vm1, %v172_v49  ;;  %4226 = vmatprep.mubr.msk.f32.mxu0 %vm231_vm1, %v5052_v50  ;;  %5764 = vst [vmem:[#allocation17_spill] sm:$0xff] %v5170_v47  ;;  %v5173_v49 = vld [vmem:[%s4809_s9 + $0x60] sm:$0xff] }
  0x53   : > { %5765 = vst [vmem:[#allocation18_spill] sm:$0xff] %v5173_v49 }
  0x55   : > { %4030 = vmatmul.mubr.msk.f32.vlgmr.msra.gmra.mrb[0].mxu1 %vm231_vm1, %v173_v51  ;;  %4227 = vmatmul.mubr.msk.f32.gmra.mrb[14].mxu0 %vm231_vm1, %v5062_v52  ;;  %v5176_v51 = vld [vmem:[%s4809_s9 + $0xe2] sm:$0xff] }
  0x56   : > { %4072 = vmatpush3.msk.msra.mxu1 %vm316_vm0, %v4828_v10  ;;  %4032 = vmatprep.mubr.msk.f32.mxu1 %vm231_vm1, %v5065_v53  ;;  %v5167_v10 = vld [vmem:[%s4809_s9 + $0x58] sm:$0xff]  ;;  %5766 = vst [vmem:[#allocation19_spill] sm:$0xff] %v5176_v51 }
  0x57   : > { %4229 = vmatprep.mubr.msk.f32.mxu0 %vm231_vm1, %v5068_v54  ;;  %4115 = vmatprep.subr.msk.mxu1 %vm316_vm0, %v5073_v55  ;;  %5763 = vst [vmem:[#allocation16_spill] sm:$0xff] %v5167_v10 }
  0x59   : > { %4033 = vmatmul.mubr.msk.f32.gmra.mrb[2].mxu1 %vm231_vm1, %v5083_v56  ;;  %4230 = vmatmul.mubr.msk.f32.gmra.mrb[16].mxu0 %vm231_vm1, %v5086_v57 }
  0x5a   : > { %4035 = vmatprep.mubr.msk.f32.mxu1 %vm231_vm1, %v5091_v58  ;;  %4232 = vmatprep.mubr.msk.f32.mxu0 %vm231_vm1, %v5094_v59 }
  0x5d   : > { %4036 = vmatmul.mubr.msk.f32.gmra.mrb[4].mxu1 %vm231_vm1, %v5107_v60  ;;  %4233 = vmatmul.mubr.msk.f32.gmra.mrb[18].mxu0 %vm231_vm1, %v5110_v61 }
  0x5e   : > { %4038 = vmatprep.mubr.msk.f32.mxu1 %vm231_vm1, %v5113_v62  ;;  %4235 = vmatprep.mubr.msk.f32.mxu0 %vm231_vm1, %v5116_v63 }
  0x61   : > { %4039 = vmatmul.mubr.msk.f32.gmra.mrb[6].mxu1 %vm231_vm1, %v5127_v0  ;;  %4236 = vmatmul.mubr.msk.f32.gmra.mrb[20].mxu0 %vm231_vm1, %v5130_v2 }
  0x62   : > { %4041 = vmatprep.mubr.msk.f32.mxu1 %vm231_vm1, %v5133_v3  ;;  %4238 = vmatprep.mubr.msk.f32.mxu0 %vm231_vm1, %v5136_v4 }
  0x65   : > { %4042 = vmatmul.mubr.msk.f32.gmra.mrb[8].mxu1 %vm231_vm1, %v5147_v5  ;;  %4239 = vmatmul.mubr.msk.f32.gmra.mrb[22].mxu0 %vm231_vm1, %v5150_v6 }
  0x66   : > { %4044 = vmatprep.mubr.msk.f32.mxu1 %vm231_vm1, %v5153_v7  ;;  %4241 = vmatprep.mubr.msk.f32.mxu0 %vm231_vm1, %v5156_v9 }
  0x69   : > { %4045 = vmatmul.mubr.msk.f32.gmra.mrb[10].mxu1 %vm231_vm1, %v5167_v10  ;;  %4242 = vmatmul.mubr.msk.f32.gmra.mrb[24].mxu0 %vm231_vm1, %v5170_v47  ;;  %v5201_v47 = vld [vmem:[%s4809_s9 + $0x78] sm:$0xff] }
  0x6a   : > { %4047 = vmatprep.mubr.msk.f32.mxu1 %vm231_vm1, %v5173_v49  ;;  %4244 = vmatprep.mubr.msk.f32.mxu0 %vm231_vm1, %v5176_v51  ;;  %v5204_v51 = vld [vmem:[%s4809_s9 + $0x80] sm:$0xff] }
  0x6d   : > { %4048 = vmatmul.mubr.msk.f32.gmra.mrb[12].mxu1 %vm231_vm1, %v5187_v45  ;;  %4245 = vmatmul.mubr.msk.f32.gmra.mrb[26].mxu0 %vm231_vm1, %v1894_v43  ;;  %v5220_v43 = vld [vmem:[%s4809_s9 + $0x88] sm:$0xff] }
  0x6e   : > { %4050 = vmatprep.mubr.msk.f32.mxu1 %vm231_vm1, %v5191_v41  ;;  %4249 = vmatprep.mubr.msk.f32.mxu0 %vm231_vm1, %v5091_v58 }
  0x71   : > { %4051 = vmatmul.mubr.msk.f32.gmra.mrb[14].mxu1 %vm231_vm1, %v5201_v47  ;;  %4250 = vmatmul.mubr.msk.f32.vlgmr.msra.gmra.mrb[0].mxu0 %vm231_vm1, %v5107_v60 }
  0x72   : > { %4292 = vmatpush3.msk.msra.mxu0 %vm316_vm0, %v4933_v26  ;;  %4053 = vmatprep.mubr.msk.f32.mxu1 %vm231_vm1, %v5204_v51  ;;  %v5238_v26 = vld [vmem:[%s4809_s9 + $0x98] sm:$0xff] }
  0x73   : > { %4252 = vmatprep.mubr.msk.f32.mxu0 %vm231_vm1, %v5113_v62  ;;  %4335 = vmatprep.subr.msk.mxu0 %vm316_vm0, %v5209_v39  ;;  %v5241_v62 = vld [vmem:[%s4809_s9 + $0xa0] sm:$0xff] }
  0x75   : > { %4054 = vmatmul.mubr.msk.f32.gmra.mrb[16].mxu1 %vm231_vm1, %v5220_v43  ;;  %4253 = vmatmul.mubr.msk.f32.gmra.mrb[2].mxu0 %vm231_vm1, %v5127_v0  ;;  %v5252_v0 = vld [vmem:[%s4809_s9 + $0xa8] sm:$0xff] }
  0x76   : > { %4056 = vmatprep.mubr.msk.f32.mxu1 %vm231_vm1, %v5225_v37  ;;  %4255 = vmatprep.mubr.msk.f32.mxu0 %vm231_vm1, %v5133_v3  ;;  %v5255_v3 = vld [vmem:[%s4809_s9 + $0xb0] sm:$0xff] }
  0x79   : > { %4057 = vmatmul.mubr.msk.f32.gmra.mrb[18].mxu1 %vm231_vm1, %v5238_v26  ;;  %4256 = vmatmul.mubr.msk.f32.gmra.mrb[4].mxu0 %vm231_vm1, %v5147_v5  ;;  %v5266_v5 = vld [vmem:[%s4809_s9 + $0xb8] sm:$0xff] }
  0x7a   : > { %4059 = vmatprep.mubr.msk.f32.mxu1 %vm231_vm1, %v5241_v62  ;;  %4258 = vmatprep.mubr.msk.f32.mxu0 %vm231_vm1, %v5153_v7  ;;  %v5269_v7 = vld [vmem:[%s4809_s9 + $0xc0] sm:$0xff] }
  0x7d   : > { %4060 = vmatmul.mubr.msk.f32.gmra.mrb[20].mxu1 %vm231_vm1, %v5252_v0  ;;  %4259 = vmatmul.mubr.msk.f32.gmra.mrb[6].mxu0 %vm231_vm1, %v5167_v10  ;;  %v5280_v10 = vld [vmem:[%s4809_s9 + $0xc8] sm:$0xff] }
  0x7e   : > { %4062 = vmatprep.mubr.msk.f32.mxu1 %vm231_vm1, %v5255_v3  ;;  %4261 = vmatprep.mubr.msk.f32.mxu0 %vm231_vm1, %v5173_v49  ;;  %v5283_v49 = vld [vmem:[%s4809_s9 + $0xd0] sm:$0xff] }
  0x81   : > { %4063 = vmatmul.mubr.msk.f32.gmra.mrb[22].mxu1 %vm231_vm1, %v5266_v5  ;;  %4262 = vmatmul.mubr.msk.f32.gmra.mrb[8].mxu0 %vm231_vm1, %v5187_v45  ;;  %v199_v45 = vld [vmem:[%s4809_s9 + $0xd8] sm:$0x3f] }
  0x82   : > { %4065 = vmatprep.mubr.msk.f32.mxu1 %vm231_vm1, %v5269_v7  ;;  %4264 = vmatprep.mubr.msk.f32.mxu0 %vm231_vm1, %v5191_v41  ;;  %v818_v41 = vld [vmem:[%s4809_s9 + $0xa] sm:$0xff] }
  0x85   : > { %4066 = vmatmul.mubr.msk.f32.gmra.mrb[24].mxu1 %vm231_vm1, %v5280_v10  ;;  %4265 = vmatmul.mubr.msk.f32.gmra.mrb[10].mxu0 %vm231_vm1, %v5201_v47 }
  0x86   : > { %4068 = vmatprep.mubr.msk.f32.mxu1 %vm231_vm1, %v5283_v49  ;;  %4267 = vmatprep.mubr.msk.f32.mxu0 %vm231_vm1, %v5204_v51 }
  0x89   : > { %4069 = vmatmul.mubr.msk.f32.gmra.mrb[26].mxu1 %vm231_vm1, %v199_v45  ;;  %4268 = vmatmul.mubr.msk.f32.gmra.mrb[12].mxu0 %vm231_vm1, %v5220_v43  ;;  %v2244_v45 = vld [vmem:[%s4809_s9 + $0xf8] sm:$0x3f] }
  0x8a   : > { %4073 = vmatprep.mubr.msk.f32.mxu1 %vm231_vm1, %v817_v35  ;;  %4270 = vmatprep.mubr.msk.f32.mxu0 %vm231_vm1, %v5225_v37  ;;  %v2242_v35 = vld [vmem:[%s4809_s9 + $0xe8] sm:$0xff] }
  0x8d   : > { %4074 = vmatmul.mubr.msk.f32.vlgmr.msra.gmra.mrb[0].mxu1 %vm231_vm1, %v818_v41  ;;  %4271 = vmatmul.mubr.msk.f32.gmra.mrb[14].mxu0 %vm231_vm1, %v5238_v26  ;;  %v2243_v41 = vld [vmem:[%s4809_s9 + $0xf0] sm:$0xff] }
  0x8e   : > { %4116 = vmatpush3.msk.msra.mxu1 %vm316_vm0, %v5073_v55  ;;  %4076 = vmatprep.mubr.msk.f32.mxu1 %vm231_vm1, %v4911_v22  ;;  %v5338_v22 = vld [vmem:[%s4809_s9 + $0xd8] sm:$0xff]  ;;  %v5781_v55 = vld [vmem:[#allocation18_spill] sm:$0xff] }
  0x8f   : > { %4273 = vmatprep.mubr.msk.f32.mxu0 %vm231_vm1, %v5241_v62  ;;  %4379 = vmatprep.subr.msk.mxu1 %vm316_vm0, %v4789_v1 }
  0x91   : > { %4077 = vmatmul.mubr.msk.f32.gmra.mrb[2].mxu1 %vm231_vm1, %v4922_v23  ;;  %4274 = vmatmul.mubr.msk.f32.gmra.mrb[16].mxu0 %vm231_vm1, %v5252_v0  ;;  %v5341_v23 = vld [vmem:[%s4809_s9 + $0xe0] sm:$0xff] }
  0x92   : > { %4079 = vmatprep.mubr.msk.f32.mxu1 %vm231_vm1, %v4928_v25  ;;  %4276 = vmatprep.mubr.msk.f32.mxu0 %vm231_vm1, %v5255_v3 }
  0x95   : > { %4080 = vmatmul.mubr.msk.f32.gmra.mrb[4].mxu1 %vm231_vm1, %v4946_v28  ;;  %4277 = vmatmul.mubr.msk.f32.gmra.mrb[18].mxu0 %vm231_vm1, %v5266_v5 }
  0x96   : > { %4082 = vmatprep.mubr.msk.f32.mxu1 %vm231_vm1, %v4954_v30  ;;  %4279 = vmatprep.mubr.msk.f32.mxu0 %vm231_vm1, %v5269_v7 }
  0x99   : > { %4083 = vmatmul.mubr.msk.f32.gmra.mrb[6].mxu1 %vm231_vm1, %v4970_v32  ;;  %4280 = vmatmul.mubr.msk.f32.gmra.mrb[20].mxu0 %vm231_vm1, %v5280_v10 }
  0x9a   : > { %4085 = vmatprep.mubr.msk.f32.mxu1 %vm231_vm1, %v4976_v34  ;;  %4282 = vmatprep.mubr.msk.f32.mxu0 %vm231_vm1, %v5283_v49 }
  0x9d   : > { %4086 = vmatmul.mubr.msk.f32.gmra.mrb[8].mxu1 %vm231_vm1, %v4990_v36  ;;  %4283 = vmatmul.mubr.msk.f32.gmra.mrb[22].mxu0 %vm231_vm1, %v5338_v22 }
  0x9e   : > { %4088 = vmatprep.mubr.msk.f32.mxu1 %vm231_vm1, %v4996_v38  ;;  %4285 = vmatprep.mubr.msk.f32.mxu0 %vm231_vm1, %v5341_v23 }
  0xa1   : > { %4089 = vmatmul.mubr.msk.f32.gmra.mrb[10].mxu1 %vm231_vm1, %v5010_v40  ;;  %4286 = vmatmul.mubr.msk.f32.gmra.mrb[24].mxu0 %vm231_vm1, %v2242_v35  ;;  %v5783_v35 = vld [vmem:[#allocation21_spill] sm:$0xff] }
  0xa2   : > { %4091 = vmatprep.mubr.msk.f32.mxu1 %vm231_vm1, %v5016_v42  ;;  %4288 = vmatprep.mubr.msk.f32.mxu0 %vm231_vm1, %v2243_v41  ;;  %v2594_v41 = vld [vmem:[%s4809_s9 + $0xf9] sm:$0x3f] }
  0xa5   : > { %4092 = vmatmul.mubr.msk.f32.gmra.mrb[12].mxu1 %vm231_vm1, %v5030_v44  ;;  %4289 = vmatmul.mubr.msk.f32.gmra.mrb[26].mxu0 %vm231_vm1, %v2244_v45 }
  0xa6   : > { %4094 = vmatprep.mubr.msk.f32.mxu1 %vm231_vm1, %v5036_v46  ;;  %4293 = vmatprep.mubr.msk.f32.mxu0 %vm231_vm1, %v4818_v8  ;;  %v844_v8 = vld [vmem:[%s4809_s9 + $0xda] sm:$0x3f] }
  0xa9   : > { %4095 = vmatmul.mubr.msk.f32.gmra.mrb[14].mxu1 %vm231_vm1, %v5048_v48  ;;  %4294 = vmatmul.mubr.msk.f32.vlgmr.msra.gmra.mrb[0].mxu0 %vm231_vm1, %v4833_v11  ;;  %v5769_v11 = vld [vmem:[#allocation5_spill] sm:$0xff] }
  0xaa   : > { %4336 = vmatpush3.msk.msra.mxu0 %vm316_vm0, %v5209_v39  ;;  %4097 = vmatprep.mubr.msk.f32.mxu1 %vm231_vm1, %v5052_v50  ;;  %v5463_v39 = vld [vmem:[%s4809_s9 + $0xe1] sm:$0xff] }
  0xab   : > { %4296 = vmatprep.mubr.msk.f32.mxu0 %vm231_vm1, %v4839_v12  ;;  %v5770_v12 = vld [vmem:[#allocation11_spill] sm:$0xff] }
  0xad   : > { %4098 = vmatmul.mubr.msk.f32.gmra.mrb[16].mxu1 %vm231_vm1, %v5062_v52  ;;  %4297 = vmatmul.mubr.msk.f32.gmra.mrb[2].mxu0 %vm231_vm1, %v4852_v13  ;;  %v5771_v13 = vld [vmem:[#allocation6_spill] sm:$0xff] }
  0xae   : > { %4100 = vmatprep.mubr.msk.f32.mxu1 %vm231_vm1, %v5068_v54  ;;  %4299 = vmatprep.mubr.msk.f32.mxu0 %vm231_vm1, %v4855_v14  ;;  %v5773_v14 = vld [vmem:[#allocation7_spill] sm:$0xff] }
  0xb1   : > { %4101 = vmatmul.mubr.msk.f32.gmra.mrb[18].mxu1 %vm231_vm1, %v5086_v57  ;;  %4300 = vmatmul.mubr.msk.f32.gmra.mrb[4].mxu0 %vm231_vm1, %v4866_v15  ;;  %v5774_v15 = vld [vmem:[#allocation13_spill] sm:$0xff] }
  0xb2   : > { %4103 = vmatprep.mubr.msk.f32.mxu1 %vm231_vm1, %v5094_v59  ;;  %4302 = vmatprep.mubr.msk.f32.mxu0 %vm231_vm1, %v4869_v16  ;;  %v5775_v16 = vld [vmem:[#allocation8_spill] sm:$0xff] }
  0xb5   : > { %4104 = vmatmul.mubr.msk.f32.gmra.mrb[20].mxu1 %vm231_vm1, %v5110_v61  ;;  %4303 = vmatmul.mubr.msk.f32.gmra.mrb[6].mxu0 %vm231_vm1, %v4880_v17  ;;  %v5776_v17 = vld [vmem:[#allocation14_spill] sm:$0xff] }
  0xb6   : > { %4106 = vmatprep.mubr.msk.f32.mxu1 %vm231_vm1, %v5116_v63  ;;  %4305 = vmatprep.mubr.msk.f32.mxu0 %vm231_vm1, %v4883_v18  ;;  %v5777_v18 = vld [vmem:[#allocation9_spill] sm:$0xff] }
  0xb9   : > { %4107 = vmatmul.mubr.msk.f32.gmra.mrb[22].mxu1 %vm231_vm1, %v5130_v2  ;;  %4306 = vmatmul.mubr.msk.f32.gmra.mrb[8].mxu0 %vm231_vm1, %v4894_v19  ;;  %v5778_v19 = vld [vmem:[#allocation15_spill] sm:$0xff] }
  0xba   : > { %4109 = vmatprep.mubr.msk.f32.mxu1 %vm231_vm1, %v5136_v4  ;;  %4308 = vmatprep.mubr.msk.f32.mxu0 %vm231_vm1, %v4897_v20  ;;  %v5779_v20 = vld [vmem:[#allocation10_spill] sm:$0xff] }
  0xbd   : > { %4110 = vmatmul.mubr.msk.f32.gmra.mrb[24].mxu1 %vm231_vm1, %v5150_v6  ;;  %4309 = vmatmul.mubr.msk.f32.gmra.mrb[10].mxu0 %vm231_vm1, %v4908_v21  ;;  %v5460_v21 = vld [vmem:[%s4809_s9 + $0xd9] sm:$0xff] }
  0xbe   : > { %4112 = vmatprep.mubr.msk.f32.mxu1 %vm231_vm1, %v5156_v9  ;;  %4311 = vmatprep.mubr.msk.f32.mxu0 %vm231_vm1, %v4925_v24 }
  0xc1   : > { %4113 = vmatmul.mubr.msk.f32.gmra.mrb[26].mxu1 %vm231_vm1, %v844_v8  ;;  %4312 = vmatmul.mubr.msk.f32.gmra.mrb[12].mxu0 %vm231_vm1, %v4943_v27 }
  0xc2   : > { %4117 = vmatprep.mubr.msk.f32.mxu1 %vm231_vm1, %v5065_v53  ;;  %4314 = vmatprep.mubr.msk.f32.mxu0 %vm231_vm1, %v4951_v29  ;;  %v5780_v53 = vld [vmem:[#allocation16_spill] sm:$0xff] }
  0xc5   : > { %4118 = vmatmul.mubr.msk.f32.vlgmr.msra.gmra.mrb[0].mxu1 %vm231_vm1, %v5083_v56  ;;  %4315 = vmatmul.mubr.msk.f32.gmra.mrb[14].mxu0 %vm231_vm1, %v4967_v31  ;;  %v2592_v56 = vld [vmem:[%s4809_s9 + $0xe9] sm:$0xff] }
  0xc6   : > { %4380 = vmatpush3.msk.msra.mxu1 %vm316_vm0, %v4789_v1  ;;  %4120 = vmatprep.mubr.msk.f32.mxu1 %vm231_vm1, %v5091_v58  ;;  %v5772_v1 = vld [vmem:[#allocation12_spill] sm:$0xff]  ;;  %v2593_v58 = vld [vmem:[%s4809_s9 + $0xf1] sm:$0xff] }
  0xc7   : > { %4317 = vmatprep.mubr.msk.f32.mxu0 %vm231_vm1, %v4973_v33 }
  0xc9   : > { %4121 = vmatmul.mubr.msk.f32.gmra.mrb[2].mxu1 %vm231_vm1, %v5107_v60  ;;  %4318 = vmatmul.mubr.msk.f32.gmra.mrb[16].mxu0 %vm231_vm1, %v5769_v11  ;;  %v5782_v60 = vld [vmem:[#allocation20_spill] sm:$0xff] }
  0xca   : > { %4123 = vmatprep.mubr.msk.f32.mxu1 %vm231_vm1, %v5770_v12  ;;  %4320 = vmatprep.mubr.msk.f32.mxu0 %vm231_vm1, %v5771_v13 }
  0xcd   : > { %4124 = vmatmul.mubr.msk.f32.gmra.mrb[4].mxu1 %vm231_vm1, %v5772_v1  ;;  %4321 = vmatmul.mubr.msk.f32.gmra.mrb[18].mxu0 %vm231_vm1, %v5773_v14 }
  0xce   : > { %4126 = vmatprep.mubr.msk.f32.mxu1 %vm231_vm1, %v5774_v15  ;;  %4323 = vmatprep.mubr.msk.f32.mxu0 %vm231_vm1, %v5775_v16 }
  0xd1   : > { %4127 = vmatmul.mubr.msk.f32.gmra.mrb[6].mxu1 %vm231_vm1, %v5776_v17  ;;  %4324 = vmatmul.mubr.msk.f32.gmra.mrb[20].mxu0 %vm231_vm1, %v5777_v18 }
  0xd2   : > { %4129 = vmatprep.mubr.msk.f32.mxu1 %vm231_vm1, %v5778_v19  ;;  %4326 = vmatprep.mubr.msk.f32.mxu0 %vm231_vm1, %v5779_v20 }
  0xd5   : > { %4130 = vmatmul.mubr.msk.f32.gmra.mrb[8].mxu1 %vm231_vm1, %v5780_v53  ;;  %4327 = vmatmul.mubr.msk.f32.gmra.mrb[22].mxu0 %vm231_vm1, %v5460_v21 }
  0xd6   : > { %4132 = vmatprep.mubr.msk.f32.mxu1 %vm231_vm1, %v5781_v55  ;;  %4329 = vmatprep.mubr.msk.f32.mxu0 %vm231_vm1, %v5463_v39 }
  0xd9   : > { %4133 = vmatmul.mubr.msk.f32.gmra.mrb[10].mxu1 %vm231_vm1, %v5782_v60  ;;  %4330 = vmatmul.mubr.msk.f32.gmra.mrb[24].mxu0 %vm231_vm1, %v2592_v56 }
  0xda   : > { %4135 = vmatprep.mubr.msk.f32.mxu1 %vm231_vm1, %v5783_v35  ;;  %4332 = vmatprep.mubr.msk.f32.mxu0 %vm231_vm1, %v2593_v58 }
  0xdd   : > { %4136 = vmatmul.mubr.msk.f32.gmra.mrb[12].mxu1 %vm231_vm1, %v5201_v47  ;;  %4333 = vmatmul.mubr.msk.f32.gmra.mrb[26].mxu0 %vm231_vm1, %v2594_v41 }
  0xde   : > { %4138 = vmatprep.mubr.msk.f32.mxu1 %vm231_vm1, %v5204_v51  ;;  %4337 = vmatprep.mubr.msk.f32.mxu0 %vm231_vm1, %v4928_v25  ;;  %v1194_v25 = vld [vmem:[%s4809_s9 + $0xe8] sm:$0x3f] }
  0xe1   : > { %4139 = vmatmul.mubr.msk.f32.gmra.mrb[14].mxu1 %vm231_vm1, %v5220_v43  ;;  %4338 = vmatmul.mubr.msk.f32.vlgmr.msra.gmra.mrb[0].mxu0 %vm231_vm1, %v4946_v28  ;;  %v2942_v28 = vld [vmem:[%s4809_s9 + $0xea] sm:$0xff] }
  0xe2   : > { %4141 = vmatprep.mubr.msk.f32.mxu1 %vm231_vm1, %v5225_v37  ;;  %4340 = vmatprep.mubr.msk.f32.mxu0 %vm231_vm1, %v4954_v30  ;;  %v1544_v30 = vld [vmem:[%s4809_s9 + $0xe9] sm:$0x3f] }
  0xe5   : > { %4142 = vmatmul.mubr.msk.f32.gmra.mrb[16].mxu1 %vm231_vm1, %v5238_v26  ;;  %4341 = vmatmul.mubr.msk.f32.gmra.mrb[2].mxu0 %vm231_vm1, %v4970_v32  ;;  %v4711_v32 = vmov 0.0  }
  0xe6   : > { %4144 = vmatprep.mubr.msk.f32.mxu1 %vm231_vm1, %v5241_v62  ;;  %4343 = vmatprep.mubr.msk.f32.mxu0 %vm231_vm1, %v4976_v34  ;;  %3358 = vst [vmem:[%s5600_s4 + $0xde] sm:$0xff] %v4711_v32  ;;  %3359 = vst [vmem:[%s5600_s4 + $0xe6] sm:$0xff] %v4711_v32 }
  0xe7   : > { %3360 = vst [vmem:[%s5600_s4 + $0xee] sm:$0xff] %v4711_v32  ;;  %3361 = vst [vmem:[%s5600_s4 + $0xf6] sm:$0xff] %v4711_v32 }
  0xe8   : > { %3362 = vst [vmem:[%s5600_s4 + $0xfe] sm:$0x3] %v4711_v32 }
  0xe9   : > { %4145 = vmatmul.mubr.msk.f32.gmra.mrb[18].mxu1 %vm231_vm1, %v5252_v0  ;;  %4344 = vmatmul.mubr.msk.f32.gmra.mrb[4].mxu0 %vm231_vm1, %v4990_v36 }
  0xea   : > { %4147 = vmatprep.mubr.msk.f32.mxu1 %vm231_vm1, %v5255_v3  ;;  %4346 = vmatprep.mubr.msk.f32.mxu0 %vm231_vm1, %v4996_v38 }
  0xed   : > { %4148 = vmatmul.mubr.msk.f32.gmra.mrb[20].mxu1 %vm231_vm1, %v5266_v5  ;;  %4347 = vmatmul.mubr.msk.f32.gmra.mrb[6].mxu0 %vm231_vm1, %v5010_v40 }
  0xee   : > { %4150 = vmatprep.mubr.msk.f32.mxu1 %vm231_vm1, %v5269_v7  ;;  %4349 = vmatprep.mubr.msk.f32.mxu0 %vm231_vm1, %v5016_v42 }
  0xf1   : > { %4151 = vmatmul.mubr.msk.f32.gmra.mrb[22].mxu1 %vm231_vm1, %v5280_v10  ;;  %4350 = vmatmul.mubr.msk.f32.gmra.mrb[8].mxu0 %vm231_vm1, %v5030_v44 }
  0xf2   : > { %4153 = vmatprep.mubr.msk.f32.mxu1 %vm231_vm1, %v5283_v49  ;;  %4352 = vmatprep.mubr.msk.f32.mxu0 %vm231_vm1, %v5036_v46 }
  0xf5   : > { %4154 = vmatmul.mubr.msk.f32.gmra.mrb[24].mxu1 %vm231_vm1, %v5338_v22  ;;  %4353 = vmatmul.mubr.msk.f32.gmra.mrb[10].mxu0 %vm231_vm1, %v5048_v48 }
  0xf6   : > { %4156 = vmatprep.mubr.msk.f32.mxu1 %vm231_vm1, %v5341_v23  ;;  %4355 = vmatprep.mubr.msk.f32.mxu0 %vm231_vm1, %v5052_v50 }
  0xf9   : > { %4157 = vmatmul.mubr.msk.f32.gmra.mrb[26].mxu1 %vm231_vm1, %v1194_v25  ;;  %4356 = vmatmul.mubr.msk.f32.gmra.mrb[12].mxu0 %vm231_vm1, %v5062_v52 }
  0xfa   : > { %4182 = vmatprep.mubr.msk.f32.mxu1 %vm231_vm1, %v4925_v24  ;;  %4358 = vmatprep.mubr.msk.f32.mxu0 %vm231_vm1, %v5068_v54  ;;  %v5784_v24 = vld [vmem:[#allocation17_spill] sm:$0xff] }
  0xfd   : > { %4183 = vmatmul.mubr.msk.f32.vlgmr.msra.gmra.mrb[14].mxu1 %vm231_vm1, %v4943_v27  ;;  %4359 = vmatmul.mubr.msk.f32.gmra.mrb[14].mxu0 %vm231_vm1, %v5086_v57  ;;  %v5785_v27 = vld [vmem:[#allocation19_spill] sm:$0xff] }
  0xfe   : > { %4185 = vmatprep.mubr.msk.f32.mxu1 %vm231_vm1, %v4951_v29  ;;  %4361 = vmatprep.mubr.msk.f32.mxu0 %vm231_vm1, %v5094_v59  ;;  %v2943_v29 = vld [vmem:[%s4809_s9 + $0xf2] sm:$0xff] }
 0x101   : > { %4186 = vmatmul.mubr.msk.f32.gmra.mrb[16].mxu1 %vm231_vm1, %v4967_v31  ;;  %4362 = vmatmul.mubr.msk.f32.gmra.mrb[16].mxu0 %vm231_vm1, %v5110_v61  ;;  %v2944_v31 = vld [vmem:[%s4809_s9 + $0xfa] sm:$0x3f]  ;;  %v5612_v61 = vld [vmem:[%s5725_s2] ss:$0 sm:$0xff] }
 0x102   : > { %4188 = vmatprep.mubr.msk.f32.mxu1 %vm231_vm1, %v4973_v33  ;;  %4364 = vmatprep.mubr.msk.f32.mxu0 %vm231_vm1, %v5116_v63 }
 0x105   : > { %4189 = vmatmul.mubr.msk.f32.gmra.mrb[18].mxu1 %vm231_vm1, %v5769_v11  ;;  %4365 = vmatmul.mubr.msk.f32.gmra.mrb[18].mxu0 %vm231_vm1, %v5130_v2 }
 0x106   : > { %4191 = vmatprep.mubr.msk.f32.mxu1 %vm231_vm1, %v5771_v13  ;;  %4367 = vmatprep.mubr.msk.f32.mxu0 %vm231_vm1, %v5136_v4 }
 0x109   : > { %4192 = vmatmul.mubr.msk.f32.gmra.mrb[20].mxu1 %vm231_vm1, %v5773_v14  ;;  %4368 = vmatmul.mubr.msk.f32.gmra.mrb[20].mxu0 %vm231_vm1, %v5150_v6 }
 0x10a   : > { %4194 = vmatprep.mubr.msk.f32.mxu1 %vm231_vm1, %v5775_v16  ;;  %4370 = vmatprep.mubr.msk.f32.mxu0 %vm231_vm1, %v5156_v9 }
 0x10d   : > { %4195 = vmatmul.mubr.msk.f32.gmra.mrb[22].mxu1 %vm231_vm1, %v5777_v18  ;;  %4371 = vmatmul.mubr.msk.f32.gmra.mrb[22].mxu0 %vm231_vm1, %v5784_v24 }
 0x10e   : > { %4197 = vmatprep.mubr.msk.f32.mxu1 %vm231_vm1, %v5779_v20  ;;  %4373 = vmatprep.mubr.msk.f32.mxu0 %vm231_vm1, %v5785_v27 }
 0x111   : > { %4198 = vmatmul.mubr.msk.f32.gmra.mrb[24].mxu1 %vm231_vm1, %v5460_v21  ;;  %4374 = vmatmul.mubr.msk.f32.gmra.mrb[24].mxu0 %vm231_vm1, %v2942_v28 }
 0x112   : > { %4200 = vmatprep.mubr.msk.f32.mxu1 %vm231_vm1, %v5463_v39  ;;  %4376 = vmatprep.mubr.msk.f32.mxu0 %vm231_vm1, %v2943_v29 }
 0x115   : > { %4201 = vmatmul.mubr.msk.f32.gmra.mrb[26].mxu1 %vm231_vm1, %v1544_v30  ;;  %4377 = vmatmul.mubr.msk.f32.gmra.mrb[26].mxu0 %vm231_vm1, %v2944_v31 }
 0x198   : > { %v4119_v33 = vpop.f32.mrb[0].mxu1 }
 0x199   : > { %v1350_v34 = vpop.f32.mrb[1].mxu1 }
 0x19c   : > { %v4122_v36 = vpop.f32.mrb[2].mxu1 }
 0x19d   : > { %v1360_v37 = vpop.f32.mrb[3].mxu1 }
 0x1a0   : > { %v4125_v38 = vpop.f32.mrb[4].mxu1 }
 0x1a1   : > { %v1370_v40 = vpop.f32.mrb[5].mxu1 }
 0x1a4   : > { %v4128_v42 = vpop.f32.mrb[6].mxu1 }
 0x1a5   : > { %v1380_v44 = vpop.f32.mrb[7].mxu1 }
 0x1a8   : > { %v4131_v46 = vpop.f32.mrb[8].mxu1 }
 0x1a9   : > { %v1390_v48 = vpop.f32.mrb[9].mxu1 }
 0x1ac   : > { %v4134_v50 = vpop.f32.mrb[10].mxu1 }
 0x1ad   : > { %v1400_v52 = vpop.f32.mrb[11].mxu1 }
 0x1b0   : > { %v4137_v54 = vpop.f32.mrb[12].mxu1 }
 0x1b1   : > { %v5607_v57 = vpop.f32.mrb[13].mxu1 }
 0x1b4   : > { %v4339_v59 = vpop.f32.mrb[0].mxu0 }
 0x1b5   : > { %v4381_v62 = vadd.f32 %v4339_v59, %v4119_v33  ;;  %v3100_v63 = vpop.f32.mrb[1].mxu0 }
 0x1b6   : > { %v4382_v0 = vadd.f32 %v3100_v63, %v1350_v34 }
 0x1b7   : > { %v3275_v2 = vadd.f32 %v4381_v62, %v5612_v61 }
 0x1b8   : > { %v3274_v3 = vadd.f32 %v4382_v0, %v5612_v61  ;;  %v4342_v4 = vpop.f32.mrb[2].mxu0 }
 0x1b9   : > { %v3303_v5 = vmax.f32 %v3275_v2, 0.0  ;;  %v4383_v6 = vadd.f32 %v4342_v4, %v4122_v36  ;;  %v3110_v7 = vpop.f32.mrb[3].mxu0 }
 0x1ba   : > { %v3302_v9 = vmax.f32 %v3274_v3, 0.0  ;;  %v4384_v10 = vadd.f32 %v3110_v7, %v1360_v37 }
 0x1bb   : > { %3331 = vst [vmem:[%s5600_s4 + $0x8] sm:$0xff] %v3303_v5  ;;  %v3277_v47 = vadd.f32 %v4383_v6, %v5612_v61 }
 0x1bc   : > { %3330 = vst [vmem:[%s5600_s4] sm:$0xff] %v3302_v9  ;;  %v3276_v49 = vadd.f32 %v4384_v10, %v5612_v61  ;;  %v4345_v51 = vpop.f32.mrb[4].mxu0 }
 0x1bd   : > { %v3305_v43 = vmax.f32 %v3277_v47, 0.0  ;;  %v4385_v26 = vadd.f32 %v4345_v51, %v4125_v38  ;;  %v3120_v22 = vpop.f32.mrb[5].mxu0 }
 0x1be   : > { %v3304_v23 = vmax.f32 %v3276_v49, 0.0  ;;  %v4386_v45 = vadd.f32 %v3120_v22, %v1370_v40 }
 0x1bf   : > { %3333 = vst [vmem:[%s5600_s4 + $0x18] sm:$0xff] %v3305_v43  ;;  %v3279_v8 = vadd.f32 %v4385_v26, %v5612_v61 }
 0x1c0   : > { %3332 = vst [vmem:[%s5600_s4 + $0x10] sm:$0xff] %v3304_v23  ;;  %v3278_v11 = vadd.f32 %v4386_v45, %v5612_v61  ;;  %v4348_v12 = vpop.f32.mrb[6].mxu0 }
 0x1c1   : > { %v3307_v13 = vmax.f32 %v3279_v8, 0.0  ;;  %v4387_v1 = vadd.f32 %v4348_v12, %v4128_v42  ;;  %v3130_v14 = vpop.f32.mrb[7].mxu0 }
 0x1c2   : > { %v3306_v15 = vmax.f32 %v3278_v11, 0.0  ;;  %v4388_v16 = vadd.f32 %v3130_v14, %v1380_v44 }
 0x1c3   : > { %3335 = vst [vmem:[%s5600_s4 + $0x28] sm:$0xff] %v3307_v13  ;;  %v3281_v17 = vadd.f32 %v4387_v1, %v5612_v61 }
 0x1c4   : > { %3334 = vst [vmem:[%s5600_s4 + $0x20] sm:$0xff] %v3306_v15  ;;  %v3280_v18 = vadd.f32 %v4388_v16, %v5612_v61  ;;  %v4351_v19 = vpop.f32.mrb[8].mxu0 }
 0x1c5   : > { %v3309_v20 = vmax.f32 %v3281_v17, 0.0  ;;  %v4389_v21 = vadd.f32 %v4351_v19, %v4131_v46  ;;  %v3140_v39 = vpop.f32.mrb[9].mxu0 }
 0x1c6   : > { %v3308_v53 = vmax.f32 %v3280_v18, 0.0  ;;  %v4390_v55 = vadd.f32 %v3140_v39, %v1390_v48 }
 0x1c7   : > { %3337 = vst [vmem:[%s5600_s4 + $0x38] sm:$0xff] %v3309_v20  ;;  %v3283_v56 = vadd.f32 %v4389_v21, %v5612_v61 }
 0x1c8   : > { %3336 = vst [vmem:[%s5600_s4 + $0x30] sm:$0xff] %v3308_v53  ;;  %v3282_v58 = vadd.f32 %v4390_v55, %v5612_v61  ;;  %v4354_v60 = vpop.f32.mrb[10].mxu0 }
 0x1c9   : > { %v3311_v35 = vmax.f32 %v3283_v56, 0.0  ;;  %v4391_v41 = vadd.f32 %v4354_v60, %v4134_v50  ;;  %v3150_v25 = vpop.f32.mrb[11].mxu0 }
 0x1ca   : > { %v3310_v24 = vmax.f32 %v3282_v58, 0.0  ;;  %v4392_v27 = vadd.f32 %v3150_v25, %v1400_v52 }
 0x1cb   : > { %3339 = vst [vmem:[%s5600_s4 + $0x48] sm:$0xff] %v3311_v35  ;;  %v3285_v28 = vadd.f32 %v4391_v41, %v5612_v61 }
 0x1cc   : > { %3338 = vst [vmem:[%s5600_s4 + $0x40] sm:$0xff] %v3310_v24  ;;  %v3284_v29 = vadd.f32 %v4392_v27, %v5612_v61  ;;  %v4357_v30 = vpop.f32.mrb[12].mxu0 }
 0x1cd   : > { %v3313_v31 = vmax.f32 %v3285_v28, 0.0  ;;  %v4393_v32 = vadd.f32 %v4357_v30, %v4137_v54  ;;  %v3160_v33 = vpop.f32.mrb[13].mxu0 }
 0x1ce   : > { %v3312_v34 = vmax.f32 %v3284_v29, 0.0  ;;  %v4394_v36 = vadd.f32 %v3160_v33, %v5607_v57 }
 0x1cf   : > { %3341 = vst [vmem:[%s5600_s4 + $0x58] sm:$0xff] %v3313_v31  ;;  %v3287_v37 = vadd.f32 %v4393_v32, %v5612_v61 }
 0x1d0   : > { %3340 = vst [vmem:[%s5600_s4 + $0x50] sm:$0xff] %v3312_v34  ;;  %v3286_v38 = vadd.f32 %v4394_v36, %v5612_v61  ;;  %v4184_v40 = vpop.f32.mrb[14].mxu1  ;;  %v4360_v42 = vpop.f32.mrb[14].mxu0 }
 0x1d1   : > { %v3315_v44 = vmax.f32 %v3287_v37, 0.0  ;;  %v4395_v46 = vadd.f32 %v4360_v42, %v4184_v40  ;;  %v1770_v48 = vpop.f32.mrb[15].mxu1  ;;  %v3170_v50 = vpop.f32.mrb[15].mxu0 }
 0x1d2   : > { %v3314_v52 = vmax.f32 %v3286_v38, 0.0  ;;  %v4396_v54 = vadd.f32 %v3170_v50, %v1770_v48 }
 0x1d3   : > { %3343 = vst [vmem:[%s5600_s4 + $0x68] sm:$0xff] %v3315_v44  ;;  %v3289_v59 = vadd.f32 %v4395_v46, %v5612_v61 }
 0x1d4   : > { %3342 = vst [vmem:[%s5600_s4 + $0x60] sm:$0xff] %v3314_v52  ;;  %v3288_v57 = vadd.f32 %v4396_v54, %v5612_v61  ;;  %v4187_v62 = vpop.f32.mrb[16].mxu1  ;;  %v4363_v63 = vpop.f32.mrb[16].mxu0 }
 0x1d5   : > { %v3317_v0 = vmax.f32 %v3289_v59, 0.0  ;;  %v4397_v2 = vadd.f32 %v4363_v63, %v4187_v62  ;;  %v1780_v3 = vpop.f32.mrb[17].mxu1  ;;  %v3180_v4 = vpop.f32.mrb[17].mxu0 }
 0x1d6   : > { %v3316_v5 = vmax.f32 %v3288_v57, 0.0  ;;  %v4398_v6 = vadd.f32 %v3180_v4, %v1780_v3 }
 0x1d7   : > { %3345 = vst [vmem:[%s5600_s4 + $0x78] sm:$0xff] %v3317_v0  ;;  %v3291_v7 = vadd.f32 %v4397_v2, %v5612_v61 }
 0x1d8   : > { %3344 = vst [vmem:[%s5600_s4 + $0x70] sm:$0xff] %v3316_v5  ;;  %v3290_v9 = vadd.f32 %v4398_v6, %v5612_v61  ;;  %v4190_v10 = vpop.f32.mrb[18].mxu1  ;;  %v4366_v47 = vpop.f32.mrb[18].mxu0 }
 0x1d9   : > { %v3319_v49 = vmax.f32 %v3291_v7, 0.0  ;;  %v4399_v51 = vadd.f32 %v4366_v47, %v4190_v10  ;;  %v1790_v43 = vpop.f32.mrb[19].mxu1  ;;  %v3190_v26 = vpop.f32.mrb[19].mxu0 }
 0x1da   : > { %v3318_v22 = vmax.f32 %v3290_v9, 0.0  ;;  %v4400_v23 = vadd.f32 %v3190_v26, %v1790_v43 }
 0x1db   : > { %3347 = vst [vmem:[%s5600_s4 + $0x88] sm:$0xff] %v3319_v49  ;;  %v3293_v45 = vadd.f32 %v4399_v51, %v5612_v61 }
 0x1dc   : > { %3346 = vst [vmem:[%s5600_s4 + $0x80] sm:$0xff] %v3318_v22  ;;  %v3292_v8 = vadd.f32 %v4400_v23, %v5612_v61  ;;  %v4193_v11 = vpop.f32.mrb[20].mxu1  ;;  %v4369_v12 = vpop.f32.mrb[20].mxu0 }
 0x1dd   : > { %v3321_v13 = vmax.f32 %v3293_v45, 0.0  ;;  %v4401_v1 = vadd.f32 %v4369_v12, %v4193_v11  ;;  %v1800_v14 = vpop.f32.mrb[21].mxu1  ;;  %v3200_v15 = vpop.f32.mrb[21].mxu0 }
 0x1de   : > { %v3320_v16 = vmax.f32 %v3292_v8, 0.0  ;;  %v4402_v17 = vadd.f32 %v3200_v15, %v1800_v14 }
 0x1df   : > { %3349 = vst [vmem:[%s5600_s4 + $0x98] sm:$0xff] %v3321_v13  ;;  %v3295_v18 = vadd.f32 %v4401_v1, %v5612_v61 }
 0x1e0   : > { %3348 = vst [vmem:[%s5600_s4 + $0x90] sm:$0xff] %v3320_v16  ;;  %v3294_v19 = vadd.f32 %v4402_v17, %v5612_v61  ;;  %v4196_v20 = vpop.f32.mrb[22].mxu1  ;;  %v4372_v21 = vpop.f32.mrb[22].mxu0 }
 0x1e1   : > { %v3323_v39 = vmax.f32 %v3295_v18, 0.0  ;;  %v4403_v53 = vadd.f32 %v4372_v21, %v4196_v20  ;;  %v1810_v55 = vpop.f32.mrb[23].mxu1  ;;  %v3210_v56 = vpop.f32.mrb[23].mxu0 }
 0x1e2   : > { %v3322_v58 = vmax.f32 %v3294_v19, 0.0  ;;  %v4404_v60 = vadd.f32 %v3210_v56, %v1810_v55 }
 0x1e3   : > { %3351 = vst [vmem:[%s5600_s4 + $0xa8] sm:$0xff] %v3323_v39  ;;  %v3297_v35 = vadd.f32 %v4403_v53, %v5612_v61 }
 0x1e4   : > { %3350 = vst [vmem:[%s5600_s4 + $0xa0] sm:$0xff] %v3322_v58  ;;  %v3296_v41 = vadd.f32 %v4404_v60, %v5612_v61  ;;  %v4199_v25 = vpop.f32.mrb[24].mxu1  ;;  %v4375_v24 = vpop.f32.mrb[24].mxu0 }
 0x1e5   : > { %v3325_v27 = vmax.f32 %v3297_v35, 0.0  ;;  %v4405_v28 = vadd.f32 %v4375_v24, %v4199_v25  ;;  %v1820_v29 = vpop.f32.mrb[25].mxu1  ;;  %v3220_v30 = vpop.f32.mrb[25].mxu0 }
 0x1e6   : > { %v3324_v31 = vmax.f32 %v3296_v41, 0.0  ;;  %v4406_v32 = vadd.f32 %v3220_v30, %v1820_v29 }
 0x1e7   : > { %3353 = vst [vmem:[%s5600_s4 + $0xb8] sm:$0xff] %v3325_v27  ;;  %v3299_v33 = vadd.f32 %v4405_v28, %v5612_v61 }
 0x1e8   : > { %3352 = vst [vmem:[%s5600_s4 + $0xb0] sm:$0xff] %v3324_v31  ;;  %v3298_v34 = vadd.f32 %v4406_v32, %v5612_v61  ;;  %v4202_v36 = vpop.f32.mrb[26].mxu1  ;;  %v4378_v37 = vpop.f32.mrb[26].mxu0 }
 0x1e9   : > { %v3327_v38 = vmax.f32 %v3299_v33, 0.0  ;;  %v4407_v40 = vadd.f32 %v4378_v37, %v4202_v36  ;;  %v1830_v42 = vpop.f32.mrb[27].mxu1  ;;  %v3230_v44 = vpop.f32.mrb[27].mxu0 }
 0x1ea   : > { %v3326_v46 = vmax.f32 %v3298_v34, 0.0  ;;  %v4408_v48 = vadd.f32 %v3230_v44, %v1830_v42 }
 0x1eb   : > { %3355 = vst [vmem:[%s5600_s4 + $0xc8] sm:$0xff] %v3327_v38  ;;  %v3301_v50 = vadd.f32 %v4407_v40, %v5612_v61 }
 0x1ec   : > { %3354 = vst [vmem:[%s5600_s4 + $0xc0] sm:$0xff] %v3326_v46  ;;  %v3300_v52 = vadd.f32 %v4408_v48, %v5612_v61 }
 0x1ed   : > { %v3329_v54 = vmax.f32 %v3301_v50, 0.0 }
 0x1ee   : > { %v3328_v59 = vmax.f32 %v3300_v52, 0.0 }
 0x1ef   : > { %3357 = vst [vmem:[%s5600_s4 + $0xd8] sm:$0x3f] %v3329_v54 }
 0x1f0   : > { %3356 = vst [vmem:[%s5600_s4 + $0xd0] sm:$0xff] %v3328_v59 }
 0x1f1   : > { %4660 = shalt.err (!%p4657_p3)
}
 0x1f2   : > { %s4661_s25 = scalar_lea.hbm %s5674_s11, 4096  ;;  %s4665_s28 = scalar_lea.hbm %s5726_s3, 8192 }
 0x1f3   : > { %p4662_p4 = scmp.ne.s32.totalorder %s5674_s11, %s4661_s25  ;;  %p4666_p9 = scmp.lt.u32.totalorder %s5674_s11, %s5726_s3 }
 0x1f4   : > { %p4667_p10 = scmp.lt.u32.totalorder %s4665_s28, %s4661_s25  ;;  %p4669_p12 = scmp.lt.u32.totalorder %s4661_s25, %s5674_s11 }
 0x1f5   : > { %p4663_p7 = pnand %p4662_p4, %p4773_p5 }
 0x1f6   : > { %p4668_p11 = por %p4667_p10, %p4666_p9 }
 0x1f7   : > { %p4664_p8 = pneg %p4663_p7 }
 0x1f8   : > { %p4670_p13 = por %p4669_p12, %p4668_p11 }
 0x1fa   : > { %p4671_p0 = pnand %p4670_p13, %p4664_p8 }
 0x1fc   : > { %4674 = shalt.err (!%p4671_p0)
}
 0x1fd   : > { %s4713_s4 = smov 128   ;;  %s4714_s5 = smov 8  }
 0x1fe   : > { %4605 = dma.vmem_to_hbm [thread:$0]  (%p4773_p5), %s5676_s8, 4096, %s5674_s11, %s5682_s16, %s4713_s4, %s4713_s4, %s4714_s5  }
 0x1ff PF: > { %p4611_p1 = scmp.ge.s32.totalorder %s4709_s15, 2  ;;  %s3392_s6 = sand.u32 1, %s4697_s12  }
 0x200   : > { %s3393_s7 = scalar_lea.sflag [#allocation3], %s3392_s6 }
 0x201   : > { %p4608_p2 = pnand %p4611_p1, %p4777_p6 }
 0x203   : > { %4692 = dma.done.wait (!%p4608_p2), %s3393_s7, 4096  }
 0x204   : > { %4694 = vsyncadd (!%p4608_p2), %s3393_s7, 4294963200  ;;  %p13_p3 = scmp.ge.s32.totalorder %s4760_s18, 4   ;;  %s5786_s12 = smov %s4701_s13 }
 0x205   : > { %s5787_s13 = smov %s4705_s14  ;;  %s5788_s14 = smov %s4771_s21 }
 0x206   : > { %s5789_s15 = smov %s4760_s18  ;;  %15 = sbr.rel (!%p13_p3) target bundleno = 3 (0x3), region = 75 }
 0x20d   :  { %3398 = vsyncpa [#allocation3], 1 }
 0x20e   :  { %3400 = vsyncpa [#allocation3 + $0x1], 1 }

</bundles_post_ra>
